<compile_context>
chip_gen: v6e
topology: v6e:2x2x1
jax: 0.10.0
libtpu: 0.0.40
codegen_flags: <defaults>
</compile_context>

<pallas_src>
import jax
import jax.numpy as jnp
from jax.experimental import pallas as pl
from jax.experimental.pallas import tpu as pltpu

_HIGHEST = jax.lax.Precision.HIGHEST
_MAX_BATCH_TILE = 1024


# --------------------------------------------------------------------------
# One-time parameter prep (at init / target-network sync, NOT per call).
# --------------------------------------------------------------------------
def prepare_params(params):
    """PyTorch layout -> kernel layout.

    W1, W2: (out, in) -> (in, out) so activations multiply as x @ W.
    W3:     kept in PyTorch (n_actions, in) layout -- the kernel consumes rows.
    biases: -> (1, out).
    """
    w1, b1, w2, b2, w3, b3 = params
    return (
        jnp.asarray(w1, jnp.float32).T,                # (n_obs, 128)
        jnp.asarray(b1, jnp.float32).reshape(1, -1),   # (1, 128)
        jnp.asarray(w2, jnp.float32).T,                # (128, 128)
        jnp.asarray(b2, jnp.float32).reshape(1, -1),   # (1, 128)
        jnp.asarray(w3, jnp.float32),                  # (n_actions, 128)
        jnp.asarray(b3, jnp.float32).reshape(1, -1),   # (1, n_actions)
    )


# --------------------------------------------------------------------------
# Kernels
# --------------------------------------------------------------------------
def _q_columns(x_ref, w1_ref, b1_ref, w2_ref, b2_ref, w3t_ref, b3_ref):
    """Per-action Q columns, each (tb, 1) f32, for the current batch tile."""
    x = x_ref[...]                      # (tb, d_in)
    d_in = x.shape[1]

    # Layer 1. K = n_obs = 4 would occupy 4/256 of the MXU contraction rows,
    # so do it as d_in broadcast FMAs on the VPU instead (falls back to the
    # MXU for wider observation vectors).
    if d_in <= 16:
        w1 = w1_ref[...]                # (d_in, H)
        h1 = x[:, 0:1] * w1[0:1, :]
        for k in range(1, d_in):
            h1 = h1 + x[:, k:k + 1] * w1[k:k + 1, :]
    else:
        h1 = jnp.dot(x, w1_ref[...], preferred_element_type=jnp.float32,
                     precision=_HIGHEST)
    h1 = jnp.maximum(h1 + b1_ref[...], 0.0)

    # Layer 2: the only real MXU matmul (128 x 128).
    h2 = jnp.dot(h1, w2_ref[...], preferred_element_type=jnp.float32,
                 precision=_HIGHEST)
    h2 = jnp.maximum(h2 + b2_ref[...], 0.0)

    # Layer 3. N = n_actions = 2 would use 2/256 MXU columns; do it as
    # per-action VPU multiply + lane (XLU) reduction instead.
    w3t = w3t_ref[...]                  # (n_actions, H)
    b3 = b3_ref[...]                    # (1, n_actions)
    n_actions = w3t.shape[0]
    return [
        jnp.sum(h2 * w3t[a:a + 1, :], axis=-1, keepdims=True) + b3[:, a:a + 1]
        for a in range(n_actions)
    ]


def _dqn_forward_kernel(x_ref, w1_ref, b1_ref, w2_ref, b2_ref, w3t_ref, b3_ref,
                        o_ref):
    q_cols = _q_columns(x_ref, w1_ref, b1_ref, w2_ref, b2_ref, w3t_ref, b3_ref)
    for a, q_a in enumerate(q_cols):
        o_ref[:, a:a + 1] = q_a


def _dqn_act_kernel(x_ref, w1_ref, b1_ref, w2_ref, b2_ref, w3t_ref, b3_ref,
                    a_ref):
    # Fused greedy-action epilogue (acting path): argmax over actions inside
    # the kernel; emits (tb, 1) int32 instead of a lane-sparse (tb, 2) f32.
    q_cols = _q_columns(x_ref, w1_ref, b1_ref, w2_ref, b2_ref, w3t_ref, b3_ref)
    best_q = q_cols[0]
    best_a = jnp.zeros(best_q.shape, jnp.int32)
    for a in range(1, len(q_cols)):
        better = q_cols[a] > best_q
        best_q = jnp.where(better, q_cols[a], best_q)
        best_a = jnp.where(better, jnp.int32(a), best_a)
    a_ref[...] = best_a


# --------------------------------------------------------------------------
# Wrappers
# --------------------------------------------------------------------------
def _grid_and_specs(B, d_in, hidden, n_actions):
    # One full-extent tile for B <= 1024 (full dims are always legal block
    # dims), 1024-row tiles above that; the partial last block is masked by
    # Pallas, so no wrapper pad/slice is needed.
    tb = B if B <= _MAX_BATCH_TILE else _MAX_BATCH_TILE
    grid = (pl.cdiv(B, tb),)
    in_specs = [
        # Activations: one batch tile per grid step.
        pl.BlockSpec((tb, d_in), lambda i: (i, 0)),
        # Weights / biases: constant index_map -> VMEM-resident, single DMA.
        pl.BlockSpec((d_in, hidden), lambda i: (0, 0)),
        pl.BlockSpec((1, hidden), lambda i: (0, 0)),
        pl.BlockSpec((hidden, hidden), lambda i: (0, 0)),
        pl.BlockSpec((1, hidden), lambda i: (0, 0)),
        pl.BlockSpec((n_actions, hidden), lambda i: (0, 0)),
        pl.BlockSpec((1, n_actions), lambda i: (0, 0)),
    ]
    return tb, grid, in_specs


@jax.jit
def dqn_forward(x, prepped_params):
    """x: (B, n_observations) f32 -> Q-values (B, n_actions) f32."""
    w1, b1, w2, b2, w3t, b3 = prepped_params
    B, d_in = x.shape
    hidden = w1.shape[1]
    n_actions = w3t.shape[0]
    tb, grid, in_specs = _grid_and_specs(B, d_in, hidden, n_actions)
    return pl.pallas_call(
        _dqn_forward_kernel,
        out_shape=jax.ShapeDtypeStruct((B, n_actions), jnp.float32),
        grid=grid,
        in_specs=in_specs,
        out_specs=pl.BlockSpec((tb, n_actions), lambda i: (i, 0)),
        compiler_params=pltpu.CompilerParams(
            dimension_semantics=("parallel",)),
    )(x, w1, b1, w2, b2, w3t, b3)


@jax.jit
def dqn_greedy_action(x, prepped_params):
    """x: (B, n_observations) f32 -> greedy actions (B, 1) int32 (fused argmax)."""
    w1, b1, w2, b2, w3t, b3 = prepped_params
    B, d_in = x.shape
    hidden = w1.shape[1]
    n_actions = w3t.shape[0]
    tb, grid, in_specs = _grid_and_specs(B, d_in, hidden, n_actions)
    return pl.pallas_call(
        _dqn_act_kernel,
        out_shape=jax.ShapeDtypeStruct((B, 1), jnp.int32),
        grid=grid,
        in_specs=in_specs,
        out_specs=pl.BlockSpec((tb, 1), lambda i: (i, 0)),
        compiler_params=pltpu.CompilerParams(
            dimension_semantics=("parallel",)),
    )(x, w1, b1, w2, b2, w3t, b3)


# --------------------------------------------------------------------------
# Init + reference
# --------------------------------------------------------------------------
def init_dqn_params(key, n_observations, n_actions, hidden=128):
    """PyTorch nn.Linear default init: U(-1/sqrt(fan_in), 1/sqrt(fan_in))."""
    ks = jax.random.split(key, 6)

    def lin(kw, kb, fan_in, fan_out):
        bound = 1.0 / jnp.sqrt(jnp.float32(fan_in))
        w = jax.random.uniform(kw, (fan_out, fan_in), jnp.float32, -bound, bound)
        b = jax.random.uniform(kb, (fan_out,), jnp.float32, -bound, bound)
        return w, b

    w1, b1 = lin(ks[0], ks[1], n_observations, hidden)
    w2, b2 = lin(ks[2], ks[3], hidden, hidden)
    w3, b3 = lin(ks[4], ks[5], hidden, n_actions)
    return (w1, b1, w2, b2, w3, b3)


def _reference_forward(x, params):
    w1, b1, w2, b2, w3, b3 = params
    h = jnp.maximum(jnp.dot(x, w1.T, precision=_HIGHEST) + b1, 0.0)
    h = jnp.maximum(jnp.dot(h, w2.T, precision=_HIGHEST) + b2, 0.0)
    return jnp.dot(h, w3.T, precision=_HIGHEST) + b3


# --------------------------------------------------------------------------
# Main
# --------------------------------------------------------------------------
if __name__ == "__main__":
    # CartPole-v1: 4 observations, 2 actions.
    n_observations, n_actions = 4, 2

    key = jax.random.PRNGKey(0)
    pkey, k1, k2, k3 = jax.random.split(key, 4)
    params = init_dqn_params(pkey, n_observations, n_actions)
    prepped = prepare_params(params)   # one-time prep, outside the hot path

    def check_forward(x, name):
        out = jax.block_until_ready(dqn_forward(x, prepped))
        ref = _reference_forward(x, params)
        assert out.shape == ref.shape, (name, out.shape, ref.shape)
        err = float(jnp.max(jnp.abs(out - ref)))
        assert jnp.allclose(out, ref, atol=1e-4, rtol=1e-4), (name, err)
        return out

    # Acting path: tiny batch, single full-extent tile, plus fused argmax.
    x_small = jax.random.normal(k1, (2, n_observations), jnp.float32)
    q_small = check_forward(x_small, "small")
    act = jax.block_until_ready(dqn_greedy_action(x_small, prepped))
    assert act.shape == (2, 1) and act.dtype == jnp.int32, (act.shape, act.dtype)
    assert jnp.array_equal(
        act[:, 0], jnp.argmax(q_small, axis=-1).astype(jnp.int32)
    ), "fused argmax mismatch"

    # Replay-style batch: single 300-row full-extent tile (no pad/slice ops).
    check_forward(jax.random.normal(k2, (300, n_observations), jnp.float32),
                  "replay")

    # Multi-tile batch: grid=(2,), partial last block masked by Pallas.
    check_forward(jax.random.normal(k3, (1100, n_observations), jnp.float32),
                  "multi_tile")

    print("KERNEL_OK")
</pallas_src>

<mosaic_0001>
module attributes {stable_mosaic.version = 11 : i64} {
  func.func @_dqn_forward_kernel(%arg0: i32, %arg1: memref<2x4xf32, #tpu.memory_space<vmem>>, %arg2: memref<4x128xf32, #tpu.memory_space<vmem>>, %arg3: memref<1x128xf32, #tpu.memory_space<vmem>>, %arg4: memref<128x128xf32, #tpu.memory_space<vmem>>, %arg5: memref<1x128xf32, #tpu.memory_space<vmem>>, %arg6: memref<2x128xf32, #tpu.memory_space<vmem>>, %arg7: memref<1x2xf32, #tpu.memory_space<vmem>>, %arg8: memref<2x2xf32, #tpu.memory_space<vmem>>) attributes {dimension_semantics = [#tpu.dimension_semantics<parallel>], iteration_bounds = array<i64: 1>, scalar_prefetch = 0 : i64, scratch_operands = 0 : i64, tpu.core_type = #tpu.core_type<tc>, window_params = [{transform_indices = @transform_0, window_bounds = array<i64: 2, 4>}, {pipeline_mode = #tpu.pipeline_mode<synchronous>, transform_indices = @transform_1, window_bounds = array<i64: 4, 128>}, {pipeline_mode = #tpu.pipeline_mode<synchronous>, transform_indices = @transform_2, window_bounds = array<i64: 1, 128>}, {pipeline_mode = #tpu.pipeline_mode<synchronous>, transform_indices = @transform_3, window_bounds = array<i64: 128, 128>}, {pipeline_mode = #tpu.pipeline_mode<synchronous>, transform_indices = @transform_4, window_bounds = array<i64: 1, 128>}, {pipeline_mode = #tpu.pipeline_mode<synchronous>, transform_indices = @transform_5, window_bounds = array<i64: 2, 128>}, {pipeline_mode = #tpu.pipeline_mode<synchronous>, transform_indices = @transform_6, window_bounds = array<i64: 1, 2>}, {transform_indices = @transform_7, window_bounds = array<i64: 2, 2>}]} {
    %c0 = arith.constant 0 : index
    %c0_0 = arith.constant 0 : index
    %0 = vector.load %arg1[%c0, %c0_0] : memref<2x4xf32, #tpu.memory_space<vmem>>, vector<2x4xf32>
    %c0_1 = arith.constant 0 : index
    %c0_2 = arith.constant 0 : index
    %1 = vector.load %arg2[%c0_1, %c0_2] : memref<4x128xf32, #tpu.memory_space<vmem>>, vector<4x128xf32>
    %2 = vector.extract_strided_slice %0 {offsets = [0, 0], sizes = [2, 1], strides = [1, 1]} : vector<2x4xf32> to vector<2x1xf32>
    %3 = vector.extract_strided_slice %1 {offsets = [0, 0], sizes = [1, 128], strides = [1, 1]} : vector<4x128xf32> to vector<1x128xf32>
    %4 = vector.broadcast %2 : vector<2x1xf32> to vector<2x128xf32>
    %5 = vector.broadcast %3 : vector<1x128xf32> to vector<2x128xf32>
    %6 = arith.mulf %4, %5 : vector<2x128xf32>
    %7 = vector.extract_strided_slice %0 {offsets = [0, 1], sizes = [2, 1], strides = [1, 1]} : vector<2x4xf32> to vector<2x1xf32>
    %8 = vector.extract_strided_slice %1 {offsets = [1, 0], sizes = [1, 128], strides = [1, 1]} : vector<4x128xf32> to vector<1x128xf32>
    %9 = vector.broadcast %7 : vector<2x1xf32> to vector<2x128xf32>
    %10 = vector.broadcast %8 : vector<1x128xf32> to vector<2x128xf32>
    %11 = arith.mulf %9, %10 : vector<2x128xf32>
    %12 = arith.addf %6, %11 : vector<2x128xf32>
    %13 = vector.extract_strided_slice %0 {offsets = [0, 2], sizes = [2, 1], strides = [1, 1]} : vector<2x4xf32> to vector<2x1xf32>
    %14 = vector.extract_strided_slice %1 {offsets = [2, 0], sizes = [1, 128], strides = [1, 1]} : vector<4x128xf32> to vector<1x128xf32>
    %15 = vector.broadcast %13 : vector<2x1xf32> to vector<2x128xf32>
    %16 = vector.broadcast %14 : vector<1x128xf32> to vector<2x128xf32>
    %17 = arith.mulf %15, %16 : vector<2x128xf32>
    %18 = arith.addf %12, %17 : vector<2x128xf32>
    %19 = vector.extract_strided_slice %0 {offsets = [0, 3], sizes = [2, 1], strides = [1, 1]} : vector<2x4xf32> to vector<2x1xf32>
    %20 = vector.extract_strided_slice %1 {offsets = [3, 0], sizes = [1, 128], strides = [1, 1]} : vector<4x128xf32> to vector<1x128xf32>
    %21 = vector.broadcast %19 : vector<2x1xf32> to vector<2x128xf32>
    %22 = vector.broadcast %20 : vector<1x128xf32> to vector<2x128xf32>
    %23 = arith.mulf %21, %22 : vector<2x128xf32>
    %24 = arith.addf %18, %23 : vector<2x128xf32>
    %c0_3 = arith.constant 0 : index
    %c0_4 = arith.constant 0 : index
    %25 = vector.load %arg3[%c0_3, %c0_4] : memref<1x128xf32, #tpu.memory_space<vmem>>, vector<1x128xf32>
    %26 = vector.broadcast %25 : vector<1x128xf32> to vector<2x128xf32>
    %27 = arith.addf %24, %26 : vector<2x128xf32>
    %cst = arith.constant 0.000000e+00 : f32
    %28 = vector.broadcast %cst : f32 to vector<2x128xf32>
    %29 = arith.maximumf %27, %28 : vector<2x128xf32>
    %c0_5 = arith.constant 0 : index
    %c0_6 = arith.constant 0 : index
    %30 = vector.load %arg4[%c0_5, %c0_6] : memref<128x128xf32, #tpu.memory_space<vmem>>, vector<128x128xf32>
    %cst_7 = arith.constant dense<0.000000e+00> : vector<2x128xf32>
    %31 = tpu.matmul %29, %30, %cst_7 {dimension_numbers = #tpu.dot_dimension_numbers<[1], [0], [0], [1], [0, 0, 1, 1], [], []>, precision = #tpu.contract_precision<fp32>} : vector<2x128xf32>, vector<128x128xf32>, vector<2x128xf32> -> vector<2x128xf32>
    %c0_8 = arith.constant 0 : index
    %c0_9 = arith.constant 0 : index
    %32 = vector.load %arg5[%c0_8, %c0_9] : memref<1x128xf32, #tpu.memory_space<vmem>>, vector<1x128xf32>
    %33 = vector.broadcast %32 : vector<1x128xf32> to vector<2x128xf32>
    %34 = arith.addf %31, %33 : vector<2x128xf32>
    %cst_10 = arith.constant 0.000000e+00 : f32
    %35 = vector.broadcast %cst_10 : f32 to vector<2x128xf32>
    %36 = arith.maximumf %34, %35 : vector<2x128xf32>
    %c0_11 = arith.constant 0 : index
    %c0_12 = arith.constant 0 : index
    %37 = vector.load %arg6[%c0_11, %c0_12] : memref<2x128xf32, #tpu.memory_space<vmem>>, vector<2x128xf32>
    %c0_13 = arith.constant 0 : index
    %c0_14 = arith.constant 0 : index
    %38 = vector.load %arg7[%c0_13, %c0_14] : memref<1x2xf32, #tpu.memory_space<vmem>>, vector<1x2xf32>
    %39 = vector.extract_strided_slice %37 {offsets = [0, 0], sizes = [1, 128], strides = [1, 1]} : vector<2x128xf32> to vector<1x128xf32>
    %40 = vector.broadcast %39 : vector<1x128xf32> to vector<2x128xf32>
    %41 = arith.mulf %36, %40 : vector<2x128xf32>
    %cst_15 = arith.constant dense<0.000000e+00> : vector<2xf32>
    %42 = vector.multi_reduction <add>, %41, %cst_15 [1] : vector<2x128xf32> to vector<2xf32>
    %43 = vector.shape_cast %42 : vector<2xf32> to vector<2x1xf32>
    %44 = vector.extract_strided_slice %38 {offsets = [0, 0], sizes = [1, 1], strides = [1, 1]} : vector<1x2xf32> to vector<1x1xf32>
    %45 = vector.broadcast %44 : vector<1x1xf32> to vector<2x1xf32>
    %46 = arith.addf %43, %45 : vector<2x1xf32>
    %47 = vector.extract_strided_slice %37 {offsets = [1, 0], sizes = [1, 128], strides = [1, 1]} : vector<2x128xf32> to vector<1x128xf32>
    %48 = vector.broadcast %47 : vector<1x128xf32> to vector<2x128xf32>
    %49 = arith.mulf %36, %48 : vector<2x128xf32>
    %cst_16 = arith.constant dense<0.000000e+00> : vector<2xf32>
    %50 = vector.multi_reduction <add>, %49, %cst_16 [1] : vector<2x128xf32> to vector<2xf32>
    %51 = vector.shape_cast %50 : vector<2xf32> to vector<2x1xf32>
    %52 = vector.extract_strided_slice %38 {offsets = [0, 1], sizes = [1, 1], strides = [1, 1]} : vector<1x2xf32> to vector<1x1xf32>
    %53 = vector.broadcast %52 : vector<1x1xf32> to vector<2x1xf32>
    %54 = arith.addf %51, %53 : vector<2x1xf32>
    %c0_17 = arith.constant 0 : index
    %c0_18 = arith.constant 0 : index
    %55 = vector.load %arg8[%c0_17, %c0_18] : memref<2x2xf32, #tpu.memory_space<vmem>>, vector<2x1xf32>
    tpu.vector_store %arg8[%c0_17, %c0_18], %46 {strides = array<i32>} : memref<2x2xf32, #tpu.memory_space<vmem>>, vector<2x1xf32>,
    %c0_19 = arith.constant 0 : index
    %c1 = arith.constant 1 : index
    %56 = vector.load %arg8[%c0_19, %c1] : memref<2x2xf32, #tpu.memory_space<vmem>>, vector<2x1xf32>
    tpu.vector_store %arg8[%c0_19, %c1], %54 {strides = array<i32>} : memref<2x2xf32, #tpu.memory_space<vmem>>, vector<2x1xf32>,
    return
  }
  func.func @transform_0(%arg0: i32) -> (i32, i32) {
    %c0_i32 = arith.constant 0 : i32
    %c0_i32_0 = arith.constant 0 : i32
    return %arg0, %c0_i32 : i32, i32
  }
  func.func @transform_1(%arg0: i32) -> (i32, i32) {
    %c0_i32 = arith.constant 0 : i32
    %c0_i32_0 = arith.constant 0 : i32
    %c0_i32_1 = arith.constant 0 : i32
    return %c0_i32, %c0_i32_0 : i32, i32
  }
  func.func @transform_2(%arg0: i32) -> (i32, i32) {
    %c0_i32 = arith.constant 0 : i32
    %c0_i32_0 = arith.constant 0 : i32
    %c0_i32_1 = arith.constant 0 : i32
    return %c0_i32, %c0_i32_0 : i32, i32
  }
  func.func @transform_3(%arg0: i32) -> (i32, i32) {
    %c0_i32 = arith.constant 0 : i32
    %c0_i32_0 = arith.constant 0 : i32
    %c0_i32_1 = arith.constant 0 : i32
    return %c0_i32, %c0_i32_0 : i32, i32
  }
  func.func @transform_4(%arg0: i32) -> (i32, i32) {
    %c0_i32 = arith.constant 0 : i32
    %c0_i32_0 = arith.constant 0 : i32
    %c0_i32_1 = arith.constant 0 : i32
    return %c0_i32, %c0_i32_0 : i32, i32
  }
  func.func @transform_5(%arg0: i32) -> (i32, i32) {
    %c0_i32 = arith.constant 0 : i32
    %c0_i32_0 = arith.constant 0 : i32
    %c0_i32_1 = arith.constant 0 : i32
    return %c0_i32, %c0_i32_0 : i32, i32
  }
  func.func @transform_6(%arg0: i32) -> (i32, i32) {
    %c0_i32 = arith.constant 0 : i32
    %c0_i32_0 = arith.constant 0 : i32
    %c0_i32_1 = arith.constant 0 : i32
    return %c0_i32, %c0_i32_0 : i32, i32
  }
  func.func @transform_7(%arg0: i32) -> (i32, i32) {
    %c0_i32 = arith.constant 0 : i32
    %c0_i32_0 = arith.constant 0 : i32
    return %arg0, %c0_i32 : i32, i32
  }
}

</mosaic_0001>

<bundles_post_ra>
// kernel: dqn_forward.1
= control target key start
LH: loop header
LB: loop body
LE: loop exit
PB: predicated region body
PF: predicated region fallthrough
CT: control target
= control target key end

     0   :  { %12 = vsyncpa [#allocation3], 0  ;;  %s1694_s0 = inlined_call_operand.hbm [shape: f32[2,4], index: 0, kind: input, shape index: {}]   ;;  %s1695_s1 = inlined_call_operand.hbm [shape: f32[4,128], index: 1, kind: input, shape index: {}]   ;;  %s1696_s2 = inlined_call_operand.vmem [shape: f32[1,128], index: 2, kind: input, shape index: {}]   ;;  %s1697_s3 = inlined_call_operand.hbm [shape: f32[128,128], index: 3, kind: input, shape index: {}]   ;;  %s1698_s4 = inlined_call_operand.vmem [shape: f32[1,128], index: 4, kind: input, shape index: {}]   ;;  %s1699_s5 = inlined_call_operand.vmem [shape: f32[2,128], index: 5, kind: input, shape index: {}]   ;;  %s1700_s6 = inlined_call_operand.vmem [shape: f32[1,2], index: 6, kind: input, shape index: {}]   ;;  %s1701_s7 = inlined_call_operand.hbm [shape: f32[2,2], index: 7, kind: output, shape index: {}]  }
   0x1   :  { %13 = vsyncpa [#allocation6], 0 }
   0x2   :  { %14 = vsyncpa [#allocation4], 0  ;;  %s1245_s24 = smov [#allocation5]   ;;  %s1246_s26 = smov [#allocation2]  }
   0x3   :  { %s31_s25 = sshll.u32 %s1245_s24, 4  ;;  %s21_s27 = sshll.u32 %s1246_s26, 4  ;;  %s32_s25 = int_to_ptr.vmem [resolvable:$true] %s31_s25  ;;  %s22_s27 = int_to_ptr.vmem [resolvable:$true] %s21_s27 }
   0x4   :  { %s1167_s28 = scalar_lea.vmem %s32_s25, 64  ;;  %p1172_p1 = scmp.lt.s32.totalorder %s32_s25, %s32_s25 }
   0x5   :  { %p1168_p0 = scmp.ne.s32.totalorder %s32_s25, %s1167_s28  ;;  %p1173_p2 = scmp.lt.s32.totalorder %s1167_s28, %s1167_s28 }
   0x7   :  { %p1174_p3 = por %p1173_p2, %p1172_p1 }
   0x9   :  { %p1175_p4 = pnand %p1174_p3, %p1168_p0 }
   0xb   :  { %1178 = shalt.err (!%p1175_p4)
}
   0xc   :  { %34 = dma.hbm_to_vmem [thread:$0]  %s1695_s1, 64, %s32_s25, [#allocation6]  }
   0xd   :  { %s1187_s8 = scalar_lea.vmem %s22_s27, 32  ;;  %p1192_p6 = scmp.lt.s32.totalorder %s22_s27, %s22_s27 }
   0xe   :  { %p1188_p5 = scmp.ne.s32.totalorder %s22_s27, %s1187_s8  ;;  %p1193_p7 = scmp.lt.s32.totalorder %s1187_s8, %s1187_s8 }
  0x10   :  { %p1194_p8 = por %p1193_p7, %p1192_p6 }
  0x12   :  { %p1195_p9 = pnand %p1194_p8, %p1188_p5 }
  0x14   :  { %1198 = shalt.err (!%p1195_p9)
}
  0x15   :  { %24 = dma.hbm_to_vmem [thread:$0]  %s1694_s0, 32, %s22_s27, [#allocation3]  }
  0x16   :  { %s1247_s11 = smov [#allocation7]  }
  0x17   :  { %s42_s12 = sshll.u32 %s1247_s11, 4  ;;  %s43_s12 = int_to_ptr.vmem [resolvable:$true] %s42_s12 }
  0x18   :  { %s1207_s13 = scalar_lea.vmem %s43_s12, 2048  ;;  %p1212_p11 = scmp.lt.s32.totalorder %s43_s12, %s43_s12 }
  0x19   :  { %p1208_p10 = scmp.ne.s32.totalorder %s43_s12, %s1207_s13  ;;  %p1213_p12 = scmp.lt.s32.totalorder %s1207_s13, %s1207_s13 }
  0x1b   :  { %p1214_p13 = por %p1213_p12, %p1212_p11 }
  0x1d   :  { %p1215_p0 = pnand %p1214_p13, %p1208_p10 }
  0x1f   :  { %1218 = shalt.err (!%p1215_p0)
}
  0x20   :  { %s1248_s1 = smov 128   ;;  %s1249_s14 = smov 8  }
  0x21   :  { %48 = dma.hbm_to_vmem [thread:$0]  %s1697_s3, 2048, %s43_s12, [#allocation6], %s1248_s1, %s1248_s1, %s1249_s14  }
  0x22   :  { %1239 = dma.done.wait [#allocation3], 32  }
  0x23   :  { %1240 = vsyncadd [#allocation3], 4294967264 }
  0x24   :  { %1241 = dma.done.wait [#allocation6], 2112  }
  0x25   :  { %1242 = vsyncadd [#allocation6], 4294965184  ;;  %v1250_v0 = vmov 0   ;;  %v1251_v1 = vmov 2   ;;  %v1252_v2 = vmov 0.0   ;;  %v130_v4 = vld [vmem:[#allocation7 + $0x78] sm:$0xff] }
  0x26   :  { %1154 = vset.pattern.permute.xlu0 %v1250_v0  ;;  %1156 = vset.pattern.permute.xlu1 %v1251_v1  ;;  %v64_v3 = vld [vmem:[#allocation2] sm:$0x3]  ;;  %v129_v5 = vld [vmem:[#allocation7 + $0x70] sm:$0xff]  ;;  %v1308_v6 = vand.u32 4294901760, %v130_v4  ;;  %v128_v8 = vld [vmem:[#allocation7 + $0x68] sm:$0xff]  ;;  %v1253_v24 = vmov 1  }
  0x27   :  { %967 = vmatprep.subr.mxu1 %v1252_v2  ;;  %932 = vmatprep.subr.mxu0 %v1252_v2  ;;  %v1310_v7 = vand.u32 4294901760, %v129_v5  ;;  %v127_v9 = vld [vmem:[#allocation7 + $0x60] sm:$0xff]  ;;  %v126_v10 = vld [vmem:[#allocation7 + $0x58] sm:$0xff]  ;;  %v1312_v11 = vand.u32 4294901760, %v128_v8  ;;  %v125_v14 = vld [vmem:[#allocation7 + $0x50] sm:$0xff]  ;;  %v1254_v25 = vmov 3  }
  0x28   :  { %68 = vperm.xlu0 %1154, %v64_v3   ;;  %87 = vperm.xlu1 %1156, %v64_v3   ;;  %v1314_v12 = vand.u32 4294901760, %v127_v9  ;;  %v1316_v13 = vand.u32 4294901760, %v126_v10  ;;  %v124_v15 = vld [vmem:[#allocation7 + $0x48] sm:$0xff]  ;;  %v1319_v16 = vsub.f32 %v130_v4, %v1308_v6  ;;  %v1325_v18 = vand.u32 4294901760, %v125_v14  ;;  %v123_v20 = vld [vmem:[#allocation7 + $0x40] sm:$0xff]  ;;  %v122_v38 = vld [vmem:[#allocation7 + $0x38] sm:$0xff] }
  0x29   :  { %v1322_v17 = vsub.f32 %v129_v5, %v1310_v7  ;;  %933 = vmatpush3.msra.mxu0 %v1308_v6  ;;  %v1327_v19 = vand.u32 4294901760, %v124_v15  ;;  %v1330_v21 = vsub.f32 %v128_v8, %v1312_v11  ;;  %v1349_v32 = vand.u32 4294901760, %v123_v20  ;;  %v121_v43 = vld [vmem:[#allocation7 + $0x30] sm:$0xff]  ;;  %v120_v44 = vld [vmem:[#allocation7 + $0x28] sm:$0xff]  ;;  %v119_v46 = vld [vmem:[#allocation7 + $0x20] sm:$0xff] }
  0x2a   :  { %v1333_v22 = vsub.f32 %v127_v9, %v1314_v12  ;;  %v1336_v23 = vsub.f32 %v126_v10, %v1316_v13  ;;  %934 = vmatprep.subr.mxu0 %v1252_v2  ;;  %v232_v26 = vand.u32 4294901760, %v1319_v16  ;;  %v1342_v28 = vsub.f32 %v125_v14, %v1325_v18  ;;  %v118_v53 = vld [vmem:[#allocation7 + $0x18] sm:$0xff]  ;;  %v117_v60 = vld [vmem:[#allocation7 + $0x10] sm:$0xff]  ;;  %v115_v14 = vld [vmem:[#allocation7] sm:$0xff] }
  0x2b   :  { %v239_v27 = vand.u32 4294901760, %v1322_v17  ;;  %v246_v29 = vand.u32 4294901760, %v1330_v21  ;;  %v1347_v31 = vsub.f32 %v124_v15, %v1327_v19  ;;  %935 = vmatpush3.msra.mxu0 %v1310_v7  ;;  %v1364_v37 = vsub.f32 %v123_v20, %v1349_v32 }
  0x2c   :  { %1155 = vset.pattern.permute.xlu0 %v1253_v24  ;;  %1157 = vset.pattern.permute.xlu1 %v1254_v25  ;;  %v253_v30 = vand.u32 4294901760, %v1333_v22  ;;  %v233_v33 = vsub.f32 %v1319_v16, %v232_v26  ;;  %v260_v35 = vand.u32 4294901760, %v1336_v23  ;;  %v267_v42 = vand.u32 4294901760, %v1342_v28 }
  0x2d   :  { %77 = vperm.xlu0 %1155, %v64_v3   ;;  %97 = vperm.xlu1 %1157, %v64_v3   ;;  %v240_v34 = vsub.f32 %v1322_v17, %v239_v27  ;;  %v247_v36 = vsub.f32 %v1330_v21, %v246_v29  ;;  %v274_v45 = vand.u32 4294901760, %v1347_v31  ;;  %v1377_v49 = vand.u32 4294901760, %v122_v38  ;;  %v116_v3 = vld [vmem:[#allocation7 + $0x8] sm:$0xff] }
  0x2e   :  { %936 = vmatprep.subr.mxu0 %v1252_v2  ;;  %v234_v39 = vand.u32 4294901760, %v233_v33  ;;  %v254_v41 = vsub.f32 %v1333_v22, %v253_v30  ;;  %v261_v48 = vsub.f32 %v1336_v23, %v260_v35  ;;  %v1711_v50 = vand.u32 4294901760, %v1364_v37 }
  0x2f   :  { %v241_v40 = vand.u32 4294901760, %v240_v34  ;;  %937 = vmatpush3.msra.mxu0 %v1312_v11  ;;  %v248_v47 = vand.u32 4294901760, %v247_v36  ;;  %v1382_v51 = vand.u32 4294901760, %v121_v43  ;;  %v1384_v52 = vand.u32 4294901760, %v120_v44 }
  0x30   :  { %938 = vmatprep.subr.mxu0 %v1252_v2  ;;  %968 = vmatpush3.msra.mxu1 %v234_v39  ;;  %v255_v54 = vand.u32 4294901760, %v254_v41  ;;  %v268_v55 = vsub.f32 %v1342_v28, %v267_v42  ;;  %v1391_v56 = vsub.f32 %v122_v38, %v1377_v49  ;;  %v1393_v57 = vand.u32 4294901760, %v119_v46 }
  0x31   :  { %1158 = vset.pattern.permute.xlu0 %v1254_v25  ;;  %939 = vmatpush3.msra.mxu0 %v1314_v12  ;;  %v275_v58 = vsub.f32 %v1347_v31, %v274_v45  ;;  %v1401_v59 = vsub.f32 %v121_v43, %v1382_v51  ;;  %v262_v61 = vand.u32 4294901760, %v261_v48  ;;  %v1406_v63 = vsub.f32 %v120_v44, %v1384_v52 }
  0x32   :  { %969 = vmatprep.subr.mxu1 %v1252_v2  ;;  %940 = vmatprep.subr.mxu0 %v1252_v2  ;;  %v1709_v62 = vand.u32 4294901760, %v1391_v56  ;;  %v1408_v0 = vand.u32 4294901760, %v118_v53  ;;  %v282_v1 = vsub.f32 %v1364_v37, %v1711_v50  ;;  %v269_v4 = vand.u32 4294901760, %v268_v55 }
  0x33   :  { %970 = vmatpush3.msra.mxu1 %v241_v40  ;;  %941 = vmatpush3.msra.mxu0 %v1316_v13  ;;  %v1708_v5 = vand.u32 4294901760, %v1401_v59  ;;  %v1418_v8 = vsub.f32 %v119_v46, %v1393_v57  ;;  %v1420_v9 = vand.u32 4294901760, %v117_v60  ;;  %v276_v10 = vand.u32 4294901760, %v275_v58 }
  0x34   :  { %971 = vmatprep.subr.mxu1 %v1252_v2  ;;  %942 = vmatprep.subr.mxu0 %v1252_v2  ;;  %v289_v15 = vsub.f32 %v1391_v56, %v1709_v62  ;;  %v1707_v20 = vand.u32 4294901760, %v1406_v63  ;;  %v1430_v24 = vsub.f32 %v118_v53, %v1408_v0  ;;  %v1432_v25 = vand.u32 4294901760, %v116_v3 }
  0x35   :  { %972 = vmatpush3.msra.mxu1 %v248_v47  ;;  %943 = vmatpush3.msra.mxu0 %v1325_v18  ;;  %v283_v33 = vand.u32 4294901760, %v282_v1  ;;  %v296_v34 = vsub.f32 %v1401_v59, %v1708_v5  ;;  %v1706_v36 = vand.u32 4294901760, %v1418_v8  ;;  %v1442_v38 = vsub.f32 %v117_v60, %v1420_v9 }
  0x36   :  { %973 = vmatprep.subr.mxu1 %v1252_v2  ;;  %944 = vmatprep.subr.mxu0 %v1252_v2  ;;  %v1444_v39 = vand.u32 4294901760, %v115_v14  ;;  %v290_v40 = vand.u32 4294901760, %v289_v15  ;;  %v303_v41 = vsub.f32 %v1406_v63, %v1707_v20  ;;  %v1705_v43 = vand.u32 4294901760, %v1430_v24  ;;  %v827_v20 = vld [vmem:[%s1696_s2] ss:$0 sm:$0xff] }
  0x37   :  { %974 = vmatpush3.msra.mxu1 %v255_v54  ;;  %945 = vmatpush3.msra.mxu0 %v1327_v19  ;;  %v1454_v44 = vsub.f32 %v116_v3, %v1432_v25  ;;  %v297_v46 = vand.u32 4294901760, %v296_v34  ;;  %v310_v47 = vsub.f32 %v1418_v8, %v1706_v36  ;;  %v1704_v48 = vand.u32 4294901760, %v1442_v38 }
  0x38   :  { %975 = vmatprep.subr.mxu1 %v1252_v2  ;;  %946 = vmatprep.subr.mxu0 %v1252_v2  ;;  %v1464_v53 = vsub.f32 %v115_v14, %v1444_v39  ;;  %v304_v54 = vand.u32 4294901760, %v303_v41  ;;  %v317_v55 = vsub.f32 %v1430_v24, %v1705_v43  ;;  %vm1255_vm0 = vmmov 0  }
  0x39   :  { %976 = vmatpush3.msra.mxu1 %v262_v61  ;;  %947 = vmatpush3.msra.mxu0 %v1349_v32  ;;  %v1703_v58 = vand.u32 4294901760, %v1454_v44  ;;  %v311_v60 = vand.u32 4294901760, %v310_v47  ;;  %v324_v61 = vsub.f32 %v1442_v38, %v1704_v48  ;;  %v71_v34 = vlaneseq  ;;  %v65_v47 = vld [vmem:[#allocation5] sm:$0xf] }
  0x3a   :  { %977 = vmatprep.subr.mxu1 %v1252_v2  ;;  %948 = vmatprep.subr.mxu0 %v1252_v2  ;;  %v1702_v1 = vand.u32 4294901760, %v1464_v53  ;;  %v318_v3 = vand.u32 4294901760, %v317_v55  ;;  %vm787_vm1 = vcmask 1041408   ;;  %vm807_vm2 = vcmask 1024  }
  0x3b   :  { %978 = vmatpush3.msra.mxu1 %v269_v4  ;;  %949 = vmatpush3.msra.mxu0 %v1377_v49  ;;  %v331_v4 = vsub.f32 %v1454_v44, %v1703_v58  ;;  %vm809_vm3 = vcmask 9224  }
  0x3c   :  { %979 = vmatprep.subr.mxu1 %v1252_v2  ;;  %950 = vmatprep.subr.mxu0 %v1252_v2  ;;  %v338_v14 = vsub.f32 %v1464_v53, %v1702_v1 }
  0x3d   :  { %980 = vmatpush3.msra.mxu1 %v276_v10  ;;  %951 = vmatpush3.msra.mxu0 %v1382_v51  ;;  %v325_v10 = vand.u32 4294901760, %v324_v61  ;;  %v332_v15 = vand.u32 4294901760, %v331_v4 }
  0x3e   :  { %981 = vmatprep.subr.mxu1 %v1252_v2  ;;  %952 = vmatprep.subr.mxu0 %v1252_v2 }
  0x3f   :  { %982 = vmatpush3.msra.mxu1 %v283_v33  ;;  %953 = vmatpush3.msra.mxu0 %v1384_v52  ;;  %v339_v33 = vand.u32 4294901760, %v338_v14 }
  0x40   :  { %983 = vmatprep.subr.mxu1 %v1252_v2  ;;  %954 = vmatprep.subr.mxu0 %v1252_v2 }
  0x41   :  { %984 = vmatpush3.msra.mxu1 %v290_v40  ;;  %955 = vmatpush3.msra.mxu0 %v1393_v57  ;;  %v1504_v40 = vshrl.u32 %v71_v34, 7 }
  0x42   :  { %985 = vmatprep.subr.mxu1 %v1252_v2  ;;  %956 = vmatprep.subr.mxu0 %v1252_v2 }
  0x43   :  { %986 = vmatpush3.msra.mxu1 %v297_v46  ;;  %999 = vmatprep.mubr.msk.f32.mxu1 %vm1255_vm0, %v1252_v2  ;;  %v1710_v41 = vsub.s32 0, %v1504_v40  ;;  %v82_v46 = vsub.s32 1, %v1504_v40  ;;  %v92_v55 = vsub.s32 2, %v1504_v40  ;;  %v102_v61 = vsub.s32 3, %v1504_v40 }
  0x44   :  { %987 = vmatprep.subr.mxu1 %v1252_v2  ;;  %957 = vmatpush3.msra.mxu0 %v1408_v0 }
  0x45   :  { %988 = vmatpush3.msra.mxu1 %v304_v54  ;;  %958 = vmatprep.subr.mxu0 %v1252_v2  ;;  %v83_v4 = vrot.slane %v65_v47, %v82_v46  ;;  %v103_v14 = vrot.slane %v65_v47, %v102_v61 }
  0x46   :  { %989 = vmatprep.subr.mxu1 %v1252_v2  ;;  %959 = vmatpush3.msra.mxu0 %v1420_v9 }
  0x47   :  { %990 = vmatpush3.msra.mxu1 %v311_v60  ;;  %960 = vmatprep.subr.mxu0 %v1252_v2 }
  0x48   :  { %991 = vmatprep.subr.mxu1 %v1252_v2  ;;  %961 = vmatpush3.msra.mxu0 %v1432_v25 }
  0x49   :  { %992 = vmatpush3.msra.mxu1 %v318_v3  ;;  %962 = vmatprep.subr.mxu0 %v1252_v2  ;;  %v74_v3 = vrot.slane %v65_v47, %v1710_v41 }
  0x4a   :  { %993 = vmatprep.subr.mxu1 %v1252_v2  ;;  %963 = vmatpush3.msra.mxu0 %v1444_v39 }
  0x4b   :  { %994 = vmatpush3.msra.mxu1 %v325_v10  ;;  %964 = vmatprep.mubr.msk.f32.mxu0 %vm1255_vm0, %v1252_v2  ;;  %v93_v10 = vrot.slane %v65_v47, %v92_v55 }
  0x4c   :  { %995 = vmatprep.subr.mxu1 %v1252_v2  ;;  %1002 = vmatprep.subr.mxu0 %v1252_v2 }
  0x4d   :  { %996 = vmatpush3.msra.mxu1 %v332_v15 }
  0x4e   :  { %997 = vmatprep.subr.mxu1 %v1252_v2 }
  0x4f   :  { %998 = vmatpush3.msra.mxu1 %v339_v33 }
  0x50   :  { %1037 = vmatprep.subr.mxu1 %v1252_v2 }
  0xa3   :  { %v69_v54 = vpop.permute.xlu0 %68  ;;  %v88_v60 = vpop.permute.xlu1 %87 }
  0xa4   :  { %v75_v34 = vmul.f32 %v74_v3, %v69_v54  ;;  %v94_v58 = vmul.f32 %v93_v10, %v88_v60 }
  0xa8   :  { %v78_v15 = vpop.permute.xlu0 %77  ;;  %v98_v33 = vpop.permute.xlu1 %97 }
  0xa9   :  { %v84_v1 = vmul.f32 %v83_v4, %v78_v15  ;;  %v104_v43 = vmul.f32 %v103_v14, %v98_v33 }
  0xab   :  { %v85_v48 = vadd.f32 %v84_v1, %v75_v34 }
  0xad   :  { %v95_v36 = vadd.f32 %v94_v58, %v85_v48 }
  0xaf   :  { %v105_v5 = vadd.f32 %v104_v43, %v95_v36 }
  0xb1   :  { %v113_v62 = vadd.f32 %v827_v20, %v105_v5 }
  0xb3   :  { %v114_v41 = vmax.f32 %v113_v62, 0.0 }
  0xb5   :  { %v1517_v50 = vand.u32 4294901760, %v114_v41 }
  0xb7   :  { %v1520_v55 = vsub.f32 %v114_v41, %v1517_v50  ;;  %1000 = vmatmul.mubr.f32.vlgmr.msra.gmra.mxu1 %v1517_v50 }
  0xb8   :  { %1038 = vmatpush3.msra.mxu1 %v1308_v6  ;;  %1069 = vmatprep.mubr.msk.f32.mxu1 %vm1255_vm0, %v1252_v2 }
  0xb9   :  { %1039 = vmatprep.subr.mxu1 %v1252_v2  ;;  %v221_v48 = vand.u32 4294901760, %v1520_v55 }
  0xba   :  { %1040 = vmatpush3.msra.mxu1 %v1310_v7 }
  0xbb   :  { %1041 = vmatprep.subr.mxu1 %v1252_v2  ;;  %v222_v62 = vsub.f32 %v1520_v55, %v221_v48 }
  0xbc   :  { %1042 = vmatpush3.msra.mxu1 %v1312_v11 }
  0xbd   :  { %1043 = vmatprep.subr.mxu1 %v1252_v2  ;;  %v223_v5 = vand.u32 4294901760, %v222_v62 }
  0xbe   :  { %1044 = vmatpush3.msra.mxu1 %v1314_v12 }
  0xbf   :  { %1045 = vmatprep.subr.mxu1 %v1252_v2  ;;  %965 = vmatmul.mubr.f32.vlgmr.msra.gmra.mxu0 %v223_v5 }
  0xc0   :  { %1003 = vmatpush3.msra.mxu0 %v1319_v16  ;;  %1046 = vmatpush3.msra.mxu1 %v1316_v13  ;;  %v1717_v16 = vand.u32 4294901760, %v1430_v24 }
  0xc1   :  { %1004 = vmatprep.subr.mxu0 %v1252_v2  ;;  %1047 = vmatprep.subr.mxu1 %v1252_v2 }
  0xc2   :  { %1005 = vmatpush3.msra.mxu0 %v1322_v17  ;;  %1048 = vmatpush3.msra.mxu1 %v1325_v18  ;;  %v1718_v17 = vand.u32 4294901760, %v1442_v38 }
  0xc3   :  { %1006 = vmatprep.subr.mxu0 %v1252_v2  ;;  %1049 = vmatprep.subr.mxu1 %v1252_v2 }
  0xc4   :  { %1007 = vmatpush3.msra.mxu0 %v1330_v21  ;;  %1050 = vmatpush3.msra.mxu1 %v1327_v19 }
  0xc5   :  { %1008 = vmatprep.subr.mxu0 %v1252_v2  ;;  %1051 = vmatprep.subr.mxu1 %v1252_v2 }
  0xc6   :  { %1009 = vmatpush3.msra.mxu0 %v1333_v22  ;;  %1052 = vmatpush3.msra.mxu1 %v1349_v32 }
  0xc7   :  { %1010 = vmatprep.subr.mxu0 %v1252_v2  ;;  %1053 = vmatprep.subr.mxu1 %v1252_v2 }
  0xc8   :  { %1011 = vmatpush3.msra.mxu0 %v1336_v23  ;;  %1054 = vmatpush3.msra.mxu1 %v1377_v49 }
  0xc9   :  { %1012 = vmatprep.subr.mxu0 %v1252_v2  ;;  %1055 = vmatprep.subr.mxu1 %v1252_v2 }
  0xca   :  { %1013 = vmatpush3.msra.mxu0 %v1342_v28  ;;  %1056 = vmatpush3.msra.mxu1 %v1382_v51 }
  0xcb   :  { %1014 = vmatprep.subr.mxu0 %v1252_v2  ;;  %1057 = vmatprep.subr.mxu1 %v1252_v2 }
  0xcc   :  { %1015 = vmatpush3.msra.mxu0 %v1347_v31  ;;  %1058 = vmatpush3.msra.mxu1 %v1384_v52  ;;  %v828_v31 = vld [vmem:[%s1698_s4] ss:$0 sm:$0xff] }
  0xcd   :  { %1016 = vmatprep.subr.mxu0 %v1252_v2  ;;  %1059 = vmatprep.subr.mxu1 %v1252_v2 }
  0xce   :  { %1017 = vmatpush3.msra.mxu0 %v1364_v37  ;;  %1060 = vmatpush3.msra.mxu1 %v1393_v57 }
  0xcf   :  { %1018 = vmatprep.subr.mxu0 %v1252_v2  ;;  %1061 = vmatprep.subr.mxu1 %v1252_v2 }
  0xd0   :  { %1019 = vmatpush3.msra.mxu0 %v1391_v56  ;;  %1062 = vmatpush3.msra.mxu1 %v1408_v0 }
  0xd1   :  { %1020 = vmatprep.subr.mxu0 %v1252_v2  ;;  %1063 = vmatprep.subr.mxu1 %v1252_v2 }
  0xd2   :  { %1021 = vmatpush3.msra.mxu0 %v1401_v59  ;;  %1064 = vmatpush3.msra.mxu1 %v1420_v9 }
  0xd3   :  { %1022 = vmatprep.subr.mxu0 %v1252_v2  ;;  %1065 = vmatprep.subr.mxu1 %v1252_v2 }
  0xd4   :  { %1023 = vmatpush3.msra.mxu0 %v1406_v63  ;;  %1066 = vmatpush3.msra.mxu1 %v1432_v25 }
  0xd5   :  { %1024 = vmatprep.subr.mxu0 %v1252_v2  ;;  %1067 = vmatprep.subr.mxu1 %v1252_v2 }
  0xd6   :  { %1025 = vmatpush3.msra.mxu0 %v1418_v8  ;;  %1068 = vmatpush3.msra.mxu1 %v1444_v39 }
  0xd7   :  { %1026 = vmatprep.subr.mxu0 %v1252_v2  ;;  %1070 = vmatmul.mubr.f32.vlgmr.msra.gmra.mxu1 %v221_v48 }
  0xd8   :  { %1107 = vmatprep.subr.mxu1 %v1252_v2  ;;  %1027 = vmatpush3.msra.mxu0 %v1430_v24 }
  0xd9   :  { %1108 = vmatpush3.msra.mxu1 %v1308_v6  ;;  %1028 = vmatprep.subr.mxu0 %v1252_v2  ;;  %v1712_v6 = vand.u32 4294901760, %v1364_v37 }
  0xda   :  { %1109 = vmatprep.subr.mxu1 %v1252_v2  ;;  %1029 = vmatpush3.msra.mxu0 %v1442_v38 }
  0xdb   :  { %1110 = vmatpush3.msra.mxu1 %v1310_v7  ;;  %1030 = vmatprep.subr.mxu0 %v1252_v2  ;;  %v1713_v7 = vand.u32 4294901760, %v1391_v56 }
  0xdc   :  { %1111 = vmatprep.subr.mxu1 %v1252_v2  ;;  %1031 = vmatpush3.msra.mxu0 %v1454_v44 }
  0xdd   :  { %1112 = vmatpush3.msra.mxu1 %v1312_v11  ;;  %1032 = vmatprep.subr.mxu0 %v1252_v2  ;;  %v1714_v11 = vand.u32 4294901760, %v1401_v59  ;;  %v1721_v59 = vsub.s32 0, %v1504_v40 }
  0xde   :  { %1113 = vmatprep.subr.mxu1 %v1252_v2  ;;  %1033 = vmatpush3.msra.mxu0 %v1464_v53 }
  0xdf   :  { %1034 = vmatprep.mubr.msk.f32.mxu0 %vm1255_vm0, %v1252_v2  ;;  %1114 = vmatpush3.msra.mxu1 %v1314_v12  ;;  %v1715_v12 = vand.u32 4294901760, %v1406_v63 }
  0xe0   :  { %1035 = vmatmul.mubr.f32.vlgmr.msra.gmra.mxu0 %v1520_v55  ;;  %1072 = vmatprep.subr.mxu0 %v1252_v2 }
  0xe1   :  { %1115 = vmatprep.subr.mxu1 %v1252_v2  ;;  %1073 = vmatpush3.msra.mxu0 %v232_v26 }
  0xe2   :  { %1116 = vmatpush3.msra.mxu1 %v1316_v13  ;;  %1074 = vmatprep.subr.mxu0 %v1252_v2  ;;  %v1716_v13 = vand.u32 4294901760, %v1418_v8 }
  0xe3   :  { %1117 = vmatprep.subr.mxu1 %v1252_v2  ;;  %1075 = vmatpush3.msra.mxu0 %v239_v27 }
  0xe4   :  { %1118 = vmatpush3.msra.mxu1 %v1325_v18  ;;  %1076 = vmatprep.subr.mxu0 %v1252_v2  ;;  %v1719_v18 = vand.u32 4294901760, %v1454_v44 }
  0xe5   :  { %1119 = vmatprep.subr.mxu1 %v1252_v2  ;;  %1077 = vmatpush3.msra.mxu0 %v246_v29 }
  0xe6   :  { %1120 = vmatpush3.msra.mxu1 %v1327_v19  ;;  %1078 = vmatprep.subr.mxu0 %v1252_v2  ;;  %v1720_v19 = vand.u32 4294901760, %v1464_v53 }
  0xe7   :  { %1121 = vmatprep.subr.mxu1 %v1252_v2  ;;  %1079 = vmatpush3.msra.mxu0 %v253_v30 }
  0xe8   :  { %1122 = vmatpush3.msra.mxu1 %v1349_v32  ;;  %1080 = vmatprep.subr.mxu0 %v1252_v2 }
  0xe9   :  { %1123 = vmatprep.subr.mxu1 %v1252_v2  ;;  %1081 = vmatpush3.msra.mxu0 %v260_v35 }
  0xea   :  { %1124 = vmatpush3.msra.mxu1 %v1377_v49  ;;  %1082 = vmatprep.subr.mxu0 %v1252_v2 }
  0xeb   :  { %1125 = vmatprep.subr.mxu1 %v1252_v2  ;;  %1083 = vmatpush3.msra.mxu0 %v267_v42 }
  0xec   :  { %1126 = vmatpush3.msra.mxu1 %v1382_v51  ;;  %1084 = vmatprep.subr.mxu0 %v1252_v2 }
  0xed   :  { %1127 = vmatprep.subr.mxu1 %v1252_v2  ;;  %1085 = vmatpush3.msra.mxu0 %v274_v45 }
  0xee   :  { %1128 = vmatpush3.msra.mxu1 %v1384_v52  ;;  %1086 = vmatprep.subr.mxu0 %v1252_v2 }
  0xef   :  { %1129 = vmatprep.subr.mxu1 %v1252_v2  ;;  %1087 = vmatpush3.msra.mxu0 %v1712_v6 }
  0xf0   :  { %1130 = vmatpush3.msra.mxu1 %v1393_v57  ;;  %1088 = vmatprep.subr.mxu0 %v1252_v2 }
  0xf1   :  { %1131 = vmatprep.subr.mxu1 %v1252_v2  ;;  %1089 = vmatpush3.msra.mxu0 %v1713_v7 }
  0xf2   :  { %1132 = vmatpush3.msra.mxu1 %v1408_v0  ;;  %1090 = vmatprep.subr.mxu0 %v1252_v2 }
  0xf3   :  { %1133 = vmatprep.subr.mxu1 %v1252_v2  ;;  %1091 = vmatpush3.msra.mxu0 %v1714_v11 }
  0xf4   :  { %1134 = vmatpush3.msra.mxu1 %v1420_v9  ;;  %1092 = vmatprep.subr.mxu0 %v1252_v2 }
  0xf5   :  { %1135 = vmatprep.subr.mxu1 %v1252_v2  ;;  %1093 = vmatpush3.msra.mxu0 %v1715_v12 }
  0xf6   :  { %1136 = vmatpush3.msra.mxu1 %v1432_v25  ;;  %1094 = vmatprep.subr.mxu0 %v1252_v2  ;;  %v829_v25 = vld [vmem:[%s1700_s6] ss:$0 sm:$0xff] }
  0xf7   :  { %1137 = vmatprep.subr.mxu1 %v1252_v2  ;;  %1095 = vmatpush3.msra.mxu0 %v1716_v13 }
  0xf8   :  { %1138 = vmatpush3.msra.mxu1 %v1444_v39  ;;  %1139 = vmatprep.mubr.msk.f32.mxu1 %vm1255_vm0, %v1252_v2 }
  0xf9   :  { %1096 = vmatprep.subr.mxu0 %v1252_v2  ;;  %1140 = vmatmul.mubr.f32.vlgmr.msra.gmra.mxu1 %v1517_v50 }
  0xfa   :  { %1097 = vmatpush3.msra.mxu0 %v1717_v16  ;;  %1104 = vmatprep.mubr.msk.f32.mxu0 %vm1255_vm0, %v1252_v2 }
  0xfb   :  { %1098 = vmatprep.subr.mxu0 %v1252_v2 }
  0xfc   :  { %1099 = vmatpush3.msra.mxu0 %v1718_v17 }
  0xfd   :  { %1100 = vmatprep.subr.mxu0 %v1252_v2 }
  0xfe   :  { %1101 = vmatpush3.msra.mxu0 %v1719_v18 }
  0xff   :  { %1102 = vmatprep.subr.mxu0 %v1252_v2 }
 0x100   :  { %1103 = vmatpush3.msra.mxu0 %v1720_v19 }
 0x101   :  { %1105 = vmatmul.mubr.f32.vlgmr.msra.gmra.mxu0 %v1517_v50  ;;  %v780_v50 = vld [vmem:[%s1699_s5] sm:$0x3]  ;;  %s1256_s5 = smov [#allocation8]  }
 0x102   :  { %v801_v57 = vrot.slane %v780_v50, %v82_v46  ;;  %v785_v63 = vrot.slane %v780_v50, %v1721_v59  ;;  %s817_s21 = sshll.u32 %s1256_s5, 4  ;;  %s818_s21 = int_to_ptr.vmem [resolvable:$true] %s817_s21 }
 0x103   :  { %s1219_s22 = scalar_lea.vmem %s818_s21, 32  ;;  %p1224_p2 = scmp.lt.s32.totalorder %s818_s21, %s818_s21 }
 0x104   :  { %p1220_p1 = scmp.ne.s32.totalorder %s818_s21, %s1219_s22  ;;  %p1225_p3 = scmp.lt.s32.totalorder %s1219_s22, %s1219_s22 }
 0x106   :  { %p1226_p4 = por %p1225_p3, %p1224_p2 }
 0x108   :  { %p1227_p5 = pnand %p1226_p4, %p1220_p1 }
 0x177   :  { %v376_v21 = vpop.f32.mrf.mxu1 }
 0x179   :  { %v1001_v22 = vpop.f32.mrf.mxu1 }
 0x17f   :  { %v225_v23 = vpop.f32.mrf.mxu0 }
 0x180   :  { %v226_v32 = vadd.f32 %v828_v31, %v225_v23 }
 0x181   :  { %v966_v26 = vpop.f32.mrf.mxu0 }
 0x182   :  { %v377_v2 = vadd.f32 %v376_v21, %v226_v32 }
 0x197   :  { %v569_v27 = vpop.f32.mrf.mxu1 }
 0x199   :  { %v1071_v28 = vpop.f32.mrf.mxu1 }
 0x1a0   :  { %v480_v29 = vpop.f32.mrf.mxu0 }
 0x1a1   :  { %v481_v42 = vadd.f32 %v480_v29, %v377_v2 }
 0x1a2   :  { %v1036_v30 = vpop.f32.mrf.mxu0 }
 0x1a3   :  { %v570_v45 = vadd.f32 %v569_v27, %v481_v42 }
 0x1b9   :  { %v775_v35 = vpop.f32.mrf.mxu1 }
 0x1bb   :  { %v1141_v37 = vpop.f32.mrf.mxu1 }
 0x1c1   :  { %v688_v49 = vpop.f32.mrf.mxu0 }
 0x1c2   :  { %v689_v51 = vadd.f32 %v688_v49, %v570_v45 }
 0x1c3   :  { %v1106_v52 = vpop.f32.mrf.mxu0 }
 0x1c4   :  { %v776_v56 = vadd.f32 %v775_v35, %v689_v51 }
 0x1c6   :  { %v779_v0 = vmax.f32 %v776_v56, 0.0 }
 0x1c8   :  { %v802_v8 = vmul.f32 %v801_v57, %v779_v0  ;;  %v786_v9 = vmul.f32 %v785_v63, %v779_v0 }
 0x1ca   :  { %v803_v20 = vsel %vm787_vm1, %v802_v8, 0.0  ;;  %v788_v24 = vsel %vm787_vm1, %v786_v9, 0.0 }
 0x1cb   :  { %804 = vadd.xlane.f32.xlu0 %v803_v20  ;;  %789 = vadd.xlane.f32.xlu1 %v788_v24 }
 0x254   :  { %v805_v36 = vpop.xlane.xlu0 %804  ;;  %v790_v38 = vpop.xlane.xlu1 %789 }
 0x255   :  { %v806_v39 = vadd.f32 %v829_v25, %v805_v36  ;;  %v797_v43 = vadd.f32 %v829_v25, %v790_v38 }
 0x257   :  { %808 = vst.msk [vmem:[#allocation8] sm:$0x3] %vm807_vm2, %v797_v43 }
 0x258   :  { %810 = vst.msk [vmem:[#allocation8] sm:$0x3] %vm809_vm3, %v806_v39 }
 0x259   :  { %1230 = shalt.err (!%p1227_p5)
}
 0x25a   :  { %820 = dma.vmem_to_hbm [thread:$0]  %s818_s21, 32, %s1701_s7, [#allocation4]  }
 0x25b   :  { %1243 = dma.done.wait [#allocation4], 32  }
 0x25c   :  { %1244 = vsyncadd [#allocation4], 4294967264 }
 0x25d   :  { %824 = vsyncpa [#allocation3], 1 }
 0x25e   :  { %825 = vsyncpa [#allocation6], 1 }
 0x25f   :  { %826 = vsyncpa [#allocation4], 1 }

</bundles_post_ra>
